<compile_context>
chip_gen: v7x
topology: tpu7x:2x2x1
jax: 0.10.0
libtpu: 0.0.40
codegen_flags: <defaults>
</compile_context>

<pallas_src>
import jax
import jax.numpy as jnp
from jax import lax
from jax.experimental import pallas as pl
from jax.experimental.pallas import tpu as pltpu


def _round_up(a, m):
    return (a + m - 1) // m * m


# ---------------------------------------------------------------------------
# Kernels
# ---------------------------------------------------------------------------
def _make_resident_kernel(num_blocks, unroll_threshold=8):
    """Whole weight stack in VMEM; loop over residual blocks in-kernel."""

    def kernel(x_ref, w0_ref, b0_ref, w1_ref, b1_ref, w2_ref, b2_ref, o_ref):
        # Stem: Linear(F->N) + ReLU (+ Dropout == identity at inference).
        h = jnp.dot(x_ref[...], w0_ref[...],
                    preferred_element_type=jnp.float32)
        h = jnp.maximum(h + b0_ref[...], 0.0)                  # f32 [TM, N]

        def block(r, h):
            identity = h
            t = jnp.dot(identity.astype(w1_ref.dtype), w1_ref[r],
                        preferred_element_type=jnp.float32)
            t = jnp.maximum(t + b1_ref[r], 0.0)                 # relu(linear1)
            t = jnp.dot(t.astype(w2_ref.dtype), w2_ref[r],
                        preferred_element_type=jnp.float32)
            t = t + b2_ref[r]                                   # linear2
            return jnp.maximum(t + identity, 0.0)               # +identity; relu

        if num_blocks <= unroll_threshold:
            # Static indices -> fully visible to the LLO scheduler.
            for r in range(num_blocks):
                h = block(r, h)
        else:
            h = lax.fori_loop(0, num_blocks, block, h)

        o_ref[...] = h.astype(o_ref.dtype)

    return kernel


def _streamed_kernel(x_ref, w0_ref, b0_ref, w1_ref, b1_ref, w2_ref, b2_ref,
                     o_ref, h_ref):
    """grid=(batch_tiles, R): one residual block's weights resident at a time."""
    r = pl.program_id(1)

    @pl.when(r == 0)
    def _stem():
        h0 = jnp.dot(x_ref[...], w0_ref[...],
                     preferred_element_type=jnp.float32)
        h_ref[...] = jnp.maximum(h0 + b0_ref[...], 0.0)

    identity = h_ref[...]                                       # f32 [TM, N]
    t = jnp.dot(identity.astype(w1_ref.dtype), w1_ref[0],
                preferred_element_type=jnp.float32)
    t = jnp.maximum(t + b1_ref[0], 0.0)
    t = jnp.dot(t.astype(w2_ref.dtype), w2_ref[0],
                preferred_element_type=jnp.float32)
    t = t + b2_ref[0]
    h_ref[...] = jnp.maximum(t + identity, 0.0)

    @pl.when(r == pl.num_programs(1) - 1)
    def _write():
        o_ref[...] = h_ref[...].astype(o_ref.dtype)


# ---------------------------------------------------------------------------
# Wrapper
# ---------------------------------------------------------------------------
def net2_forward(x, params, *, compute_dtype=jnp.bfloat16, block_m=512,
                 resident_vmem_budget=24 * 1024 * 1024, force_streamed=False):
    """x: [B, F] float32. params: dict of stacked weights (see init_params)."""
    B, F = x.shape
    w0, b0 = params["w0"], params["b0"]          # [F, N], [1, N]
    w1, b1 = params["w1"], params["b1"]          # [R, N, N], [R, N]
    w2, b2 = params["w2"], params["b2"]          # [R, N, N], [R, N]
    N = w0.shape[1]
    R = w1.shape[0]
    assert R >= 1, "Net2 with zero residual blocks is not supported here"

    # Lane-align feature and hidden dims; zero padding keeps results exact
    # (padded h columns stay 0 through every ReLU/residual).
    Fp = _round_up(F, 128)
    Np = _round_up(N, 128)

    # Batch tiling: pad B to a multiple of 8 (full sublanes); tile at block_m.
    tm = min(block_m, _round_up(B, 8))
    mb = pl.cdiv(B, tm)
    b_pad = mb * tm

    xp = jnp.pad(x, ((0, b_pad - B), (0, Fp - F))).astype(compute_dtype)
    w0p = jnp.pad(w0, ((0, Fp - F), (0, Np - N))).astype(compute_dtype)
    b0p = jnp.pad(b0.reshape(1, N), ((0, 0), (0, Np - N))).astype(jnp.float32)
    w1p = jnp.pad(w1, ((0, 0), (0, Np - N), (0, Np - N))).astype(compute_dtype)
    w2p = jnp.pad(w2, ((0, 0), (0, Np - N), (0, Np - N))).astype(compute_dtype)
    b1p = jnp.pad(b1.reshape(R, 1, N),
                  ((0, 0), (0, 0), (0, Np - N))).astype(jnp.float32)
    b2p = jnp.pad(b2.reshape(R, 1, N),
                  ((0, 0), (0, 0), (0, Np - N))).astype(jnp.float32)

    itemsize = jnp.dtype(compute_dtype).itemsize
    weight_bytes = ((Fp * Np + 2 * R * Np * Np) * itemsize
                    + (Np + 2 * R * Np) * 4)
    flops = 2 * b_pad * (Fp * Np + 2 * R * Np * Np)

    # Conservative per-step VMEM footprint of the resident path
    # (2x on everything to cover default double-buffering + live temporaries).
    resident_bytes = (2 * weight_bytes
                      + 2 * tm * Fp * itemsize          # x tile
                      + 2 * tm * Np * 4                 # output tile
                      + 2 * tm * Np * 4)                # h / temporaries
    use_resident = (not force_streamed) and resident_bytes <= resident_vmem_budget

    if use_resident:
        bytes_accessed = (xp.size * itemsize            # x read
                          + b_pad * Np * 4              # output write
                          + weight_bytes)               # weights fetched once
        out = pl.pallas_call(
            _make_resident_kernel(R),
            out_shape=jax.ShapeDtypeStruct((b_pad, Np), jnp.float32),
            grid=(mb,),
            in_specs=[
                pl.BlockSpec((tm, Fp), lambda m: (m, 0)),        # x batch tile
                pl.BlockSpec((Fp, Np), lambda m: (0, 0)),        # stem weight
                pl.BlockSpec((1, Np), lambda m: (0, 0)),         # stem bias
                pl.BlockSpec((R, Np, Np), lambda m: (0, 0, 0)),  # all linear1 W
                pl.BlockSpec((R, 1, Np), lambda m: (0, 0, 0)),   # all linear1 b
                pl.BlockSpec((R, Np, Np), lambda m: (0, 0, 0)),  # all linear2 W
                pl.BlockSpec((R, 1, Np), lambda m: (0, 0, 0)),   # all linear2 b
            ],
            out_specs=pl.BlockSpec((tm, Np), lambda m: (m, 0)),
            compiler_params=pltpu.CompilerParams(
                dimension_semantics=("parallel",),
                vmem_limit_bytes=32 * 1024 * 1024),
            cost_estimate=pl.CostEstimate(
                flops=flops, transcendentals=0, bytes_accessed=bytes_accessed),
        )(xp, w0p, b0p, w1p, b1p, w2p, b2p)
    else:
        # TODO(synk): for very large N, add a column-tiling grid axis over the
        # weight N dimension so double-buffered (1, N, N) blocks fit v7x VMEM.
        bytes_accessed = (xp.size * itemsize
                          + b_pad * Np * 4
                          + Fp * Np * itemsize + Np * 4            # stem, once
                          + mb * R * (2 * Np * Np * itemsize       # w1+w2 restreamed
                                      + 2 * Np * 4))               # b1+b2 restreamed
        out = pl.pallas_call(
            _streamed_kernel,
            out_shape=jax.ShapeDtypeStruct((b_pad, Np), jnp.float32),
            grid=(mb, R),
            in_specs=[
                pl.BlockSpec((tm, Fp), lambda m, r: (m, 0)),        # x batch tile
                pl.BlockSpec((Fp, Np), lambda m, r: (0, 0)),        # stem weight
                pl.BlockSpec((1, Np), lambda m, r: (0, 0)),         # stem bias
                pl.BlockSpec((1, Np, Np), lambda m, r: (r, 0, 0)),  # linear1 W[r]
                pl.BlockSpec((1, 1, Np), lambda m, r: (r, 0, 0)),   # linear1 b[r]
                pl.BlockSpec((1, Np, Np), lambda m, r: (r, 0, 0)),  # linear2 W[r]
                pl.BlockSpec((1, 1, Np), lambda m, r: (r, 0, 0)),   # linear2 b[r]
            ],
            out_specs=pl.BlockSpec((tm, Np), lambda m, r: (m, 0)),
            scratch_shapes=[pltpu.VMEM((tm, Np), jnp.float32)],     # resident h
            compiler_params=pltpu.CompilerParams(
                dimension_semantics=("parallel", "arbitrary")),
            cost_estimate=pl.CostEstimate(
                flops=flops, transcendentals=0, bytes_accessed=bytes_accessed),
        )(xp, w0p, b0p, w1p, b1p, w2p, b2p)

    return out[:B, :N]


# ---------------------------------------------------------------------------
# Params + pure-JAX reference
# ---------------------------------------------------------------------------
def init_params(key, num_features, num_residual_blocks, num_neurons):
    """Deterministic synthetic init, PyTorch-style U(-1/sqrt(fan_in), 1/sqrt(fan_in))."""
    ks = jax.random.split(key, 2 + 4 * num_residual_blocks)

    def lin(k, fan_in, shape):
        bound = 1.0 / jnp.sqrt(fan_in)
        return jax.random.uniform(k, shape, jnp.float32, -bound, bound)

    w0 = lin(ks[0], num_features, (num_features, num_neurons))
    b0 = lin(ks[1], num_features, (1, num_neurons))

    w1, b1, w2, b2 = [], [], [], []
    for r in range(num_residual_blocks):
        k1, k2, k3, k4 = ks[2 + 4 * r: 6 + 4 * r]
        w1.append(lin(k1, num_neurons, (num_neurons, num_neurons)))
        b1.append(lin(k2, num_neurons, (num_neurons,)))
        w2.append(lin(k3, num_neurons, (num_neurons, num_neurons)))
        b2.append(lin(k4, num_neurons, (num_neurons,)))

    return {
        "w0": w0, "b0": b0,
        "w1": jnp.stack(w1), "b1": jnp.stack(b1),
        "w2": jnp.stack(w2), "b2": jnp.stack(b2),
    }


def net2_reference(x, params, compute_dtype=jnp.float32):
    """Pure-JAX reference mirroring the PyTorch forward (eval mode)."""
    cast = lambda a: a.astype(compute_dtype)
    h = jnp.maximum(
        jnp.dot(cast(x), cast(params["w0"]),
                preferred_element_type=jnp.float32) + params["b0"], 0.0)
    for r in range(params["w1"].shape[0]):
        identity = h
        t = jnp.dot(cast(h), cast(params["w1"][r]),
                    preferred_element_type=jnp.float32)
        t = jnp.maximum(t + params["b1"][r], 0.0)
        t = jnp.dot(cast(t), cast(params["w2"][r]),
                    preferred_element_type=jnp.float32)
        t = t + params["b2"][r]
        h = jnp.maximum(t + identity, 0.0)
    return h


if __name__ == "__main__":
    # Small shapes consistent with the module: num_features=64, num_neurons=128,
    # num_residual_blocks=2, dropout_p=0.1 (inference => identity).
    F, N, R = 64, 128, 2

    key = jax.random.PRNGKey(0)
    kx, kp, kx2 = jax.random.split(key, 3)
    params = init_params(kp, F, R, N)

    # Case 1: single batch tile, resident-weight path.
    B = 8
    x = jax.random.normal(kx, (B, F), dtype=jnp.float32)
    out = jax.block_until_ready(net2_forward(x, params))
    assert out.shape == (B, N)
    ref_matched = net2_reference(x, params, compute_dtype=jnp.bfloat16)
    ref_f32 = net2_reference(x, params, compute_dtype=jnp.float32)
    assert jnp.allclose(out, ref_matched, atol=1e-3, rtol=1e-3), \
        "mismatch vs bf16-matched reference (resident)"
    assert jnp.allclose(out, ref_f32, atol=5e-2, rtol=5e-2), \
        "mismatch vs f32 reference (resident)"

    # Case 2: multiple batch tiles + padded batch, resident path.
    B2 = 40
    x2 = jax.random.normal(kx2, (B2, F), dtype=jnp.float32)
    out2 = jax.block_until_ready(net2_forward(x2, params, block_m=16))
    assert out2.shape == (B2, N)
    ref2 = net2_reference(x2, params, compute_dtype=jnp.bfloat16)
    assert jnp.allclose(out2, ref2, atol=1e-3, rtol=1e-3), \
        "mismatch vs reference (resident, tiled batch)"

    # Case 3: force the streamed-weight path (used when weights exceed VMEM).
    out3 = jax.block_until_ready(
        net2_forward(x2, params, block_m=16, force_streamed=True))
    assert out3.shape == (B2, N)
    assert jnp.allclose(out3, ref2, atol=1e-3, rtol=1e-3), \
        "mismatch vs reference (streamed path)"

    print("KERNEL_OK")
</pallas_src>

<mosaic_0001>
module attributes {stable_mosaic.version = 11 : i64} {
  func.func @kernel(%arg0: i32, %arg1: memref<8x128xbf16, #tpu.memory_space<vmem>>, %arg2: memref<128x128xbf16, #tpu.memory_space<vmem>>, %arg3: memref<1x128xf32, #tpu.memory_space<vmem>>, %arg4: memref<2x128x128xbf16, #tpu.memory_space<vmem>>, %arg5: memref<2x1x128xf32, #tpu.memory_space<vmem>>, %arg6: memref<2x128x128xbf16, #tpu.memory_space<vmem>>, %arg7: memref<2x1x128xf32, #tpu.memory_space<vmem>>, %arg8: memref<8x128xf32, #tpu.memory_space<vmem>>) attributes {dimension_semantics = [#tpu.dimension_semantics<parallel>], iteration_bounds = array<i64: 1>, scalar_prefetch = 0 : i64, scratch_operands = 0 : i64, tpu.core_type = #tpu.core_type<tc>, window_params = [{transform_indices = @transform_0, window_bounds = array<i64: 8, 128>}, {pipeline_mode = #tpu.pipeline_mode<synchronous>, transform_indices = @transform_1, window_bounds = array<i64: 128, 128>}, {pipeline_mode = #tpu.pipeline_mode<synchronous>, transform_indices = @transform_2, window_bounds = array<i64: 1, 128>}, {pipeline_mode = #tpu.pipeline_mode<synchronous>, transform_indices = @transform_3, window_bounds = array<i64: 2, 128, 128>}, {pipeline_mode = #tpu.pipeline_mode<synchronous>, transform_indices = @transform_4, window_bounds = array<i64: 2, 1, 128>}, {pipeline_mode = #tpu.pipeline_mode<synchronous>, transform_indices = @transform_5, window_bounds = array<i64: 2, 128, 128>}, {pipeline_mode = #tpu.pipeline_mode<synchronous>, transform_indices = @transform_6, window_bounds = array<i64: 2, 1, 128>}, {transform_indices = @transform_7, window_bounds = array<i64: 8, 128>}]} {
    %c0 = arith.constant 0 : index
    %c0_0 = arith.constant 0 : index
    %0 = vector.load %arg1[%c0, %c0_0] : memref<8x128xbf16, #tpu.memory_space<vmem>>, vector<8x128xbf16>
    %c0_1 = arith.constant 0 : index
    %c0_2 = arith.constant 0 : index
    %1 = vector.load %arg2[%c0_1, %c0_2] : memref<128x128xbf16, #tpu.memory_space<vmem>>, vector<128x128xbf16>
    %cst = arith.constant dense<0.000000e+00> : vector<8x128xf32>
    %2 = tpu.matmul %0, %1, %cst {dimension_numbers = #tpu.dot_dimension_numbers<[1], [0], [0], [1], [0, 0, 1, 1], [], []>} : vector<8x128xbf16>, vector<128x128xbf16>, vector<8x128xf32> -> vector<8x128xf32>
    %c0_3 = arith.constant 0 : index
    %c0_4 = arith.constant 0 : index
    %3 = vector.load %arg3[%c0_3, %c0_4] : memref<1x128xf32, #tpu.memory_space<vmem>>, vector<1x128xf32>
    %4 = vector.broadcast %3 : vector<1x128xf32> to vector<8x128xf32>
    %5 = arith.addf %2, %4 : vector<8x128xf32>
    %cst_5 = arith.constant 0.000000e+00 : f32
    %6 = vector.broadcast %cst_5 : f32 to vector<8x128xf32>
    %7 = arith.maximumf %5, %6 : vector<8x128xf32>
    %8 = arith.truncf %7 : vector<8x128xf32> to vector<8x128xbf16>
    %c0_6 = arith.constant 0 : index
    %c0_7 = arith.constant 0 : index
    %c0_8 = arith.constant 0 : index
    %9 = vector.load %arg4[%c0_6, %c0_7, %c0_8] : memref<2x128x128xbf16, #tpu.memory_space<vmem>>, vector<1x128x128xbf16>
    %10 = vector.shape_cast %9 : vector<1x128x128xbf16> to vector<128x128xbf16>
    %cst_9 = arith.constant dense<0.000000e+00> : vector<8x128xf32>
    %11 = tpu.matmul %8, %10, %cst_9 {dimension_numbers = #tpu.dot_dimension_numbers<[1], [0], [0], [1], [0, 0, 1, 1], [], []>} : vector<8x128xbf16>, vector<128x128xbf16>, vector<8x128xf32> -> vector<8x128xf32>
    %c0_10 = arith.constant 0 : index
    %c0_11 = arith.constant 0 : index
    %c0_12 = arith.constant 0 : index
    %12 = vector.load %arg5[%c0_10, %c0_11, %c0_12] : memref<2x1x128xf32, #tpu.memory_space<vmem>>, vector<1x1x128xf32>
    %13 = vector.shape_cast %12 : vector<1x1x128xf32> to vector<1x128xf32>
    %14 = vector.broadcast %13 : vector<1x128xf32> to vector<8x128xf32>
    %15 = arith.addf %11, %14 : vector<8x128xf32>
    %cst_13 = arith.constant 0.000000e+00 : f32
    %16 = vector.broadcast %cst_13 : f32 to vector<8x128xf32>
    %17 = arith.maximumf %15, %16 : vector<8x128xf32>
    %18 = arith.truncf %17 : vector<8x128xf32> to vector<8x128xbf16>
    %c0_14 = arith.constant 0 : index
    %c0_15 = arith.constant 0 : index
    %c0_16 = arith.constant 0 : index
    %19 = vector.load %arg6[%c0_14, %c0_15, %c0_16] : memref<2x128x128xbf16, #tpu.memory_space<vmem>>, vector<1x128x128xbf16>
    %20 = vector.shape_cast %19 : vector<1x128x128xbf16> to vector<128x128xbf16>
    %cst_17 = arith.constant dense<0.000000e+00> : vector<8x128xf32>
    %21 = tpu.matmul %18, %20, %cst_17 {dimension_numbers = #tpu.dot_dimension_numbers<[1], [0], [0], [1], [0, 0, 1, 1], [], []>} : vector<8x128xbf16>, vector<128x128xbf16>, vector<8x128xf32> -> vector<8x128xf32>
    %c0_18 = arith.constant 0 : index
    %c0_19 = arith.constant 0 : index
    %c0_20 = arith.constant 0 : index
    %22 = vector.load %arg7[%c0_18, %c0_19, %c0_20] : memref<2x1x128xf32, #tpu.memory_space<vmem>>, vector<1x1x128xf32>
    %23 = vector.shape_cast %22 : vector<1x1x128xf32> to vector<1x128xf32>
    %24 = vector.broadcast %23 : vector<1x128xf32> to vector<8x128xf32>
    %25 = arith.addf %21, %24 : vector<8x128xf32>
    %26 = arith.addf %25, %7 : vector<8x128xf32>
    %cst_21 = arith.constant 0.000000e+00 : f32
    %27 = vector.broadcast %cst_21 : f32 to vector<8x128xf32>
    %28 = arith.maximumf %26, %27 : vector<8x128xf32>
    %29 = arith.truncf %28 : vector<8x128xf32> to vector<8x128xbf16>
    %c1 = arith.constant 1 : index
    %c0_22 = arith.constant 0 : index
    %c0_23 = arith.constant 0 : index
    %30 = vector.load %arg4[%c1, %c0_22, %c0_23] : memref<2x128x128xbf16, #tpu.memory_space<vmem>>, vector<1x128x128xbf16>
    %31 = vector.shape_cast %30 : vector<1x128x128xbf16> to vector<128x128xbf16>
    %cst_24 = arith.constant dense<0.000000e+00> : vector<8x128xf32>
    %32 = tpu.matmul %29, %31, %cst_24 {dimension_numbers = #tpu.dot_dimension_numbers<[1], [0], [0], [1], [0, 0, 1, 1], [], []>} : vector<8x128xbf16>, vector<128x128xbf16>, vector<8x128xf32> -> vector<8x128xf32>
    %c1_25 = arith.constant 1 : index
    %c0_26 = arith.constant 0 : index
    %c0_27 = arith.constant 0 : index
    %33 = vector.load %arg5[%c1_25, %c0_26, %c0_27] : memref<2x1x128xf32, #tpu.memory_space<vmem>>, vector<1x1x128xf32>
    %34 = vector.shape_cast %33 : vector<1x1x128xf32> to vector<1x128xf32>
    %35 = vector.broadcast %34 : vector<1x128xf32> to vector<8x128xf32>
    %36 = arith.addf %32, %35 : vector<8x128xf32>
    %cst_28 = arith.constant 0.000000e+00 : f32
    %37 = vector.broadcast %cst_28 : f32 to vector<8x128xf32>
    %38 = arith.maximumf %36, %37 : vector<8x128xf32>
    %39 = arith.truncf %38 : vector<8x128xf32> to vector<8x128xbf16>
    %c1_29 = arith.constant 1 : index
    %c0_30 = arith.constant 0 : index
    %c0_31 = arith.constant 0 : index
    %40 = vector.load %arg6[%c1_29, %c0_30, %c0_31] : memref<2x128x128xbf16, #tpu.memory_space<vmem>>, vector<1x128x128xbf16>
    %41 = vector.shape_cast %40 : vector<1x128x128xbf16> to vector<128x128xbf16>
    %cst_32 = arith.constant dense<0.000000e+00> : vector<8x128xf32>
    %42 = tpu.matmul %39, %41, %cst_32 {dimension_numbers = #tpu.dot_dimension_numbers<[1], [0], [0], [1], [0, 0, 1, 1], [], []>} : vector<8x128xbf16>, vector<128x128xbf16>, vector<8x128xf32> -> vector<8x128xf32>
    %c1_33 = arith.constant 1 : index
    %c0_34 = arith.constant 0 : index
    %c0_35 = arith.constant 0 : index
    %43 = vector.load %arg7[%c1_33, %c0_34, %c0_35] : memref<2x1x128xf32, #tpu.memory_space<vmem>>, vector<1x1x128xf32>
    %44 = vector.shape_cast %43 : vector<1x1x128xf32> to vector<1x128xf32>
    %45 = vector.broadcast %44 : vector<1x128xf32> to vector<8x128xf32>
    %46 = arith.addf %42, %45 : vector<8x128xf32>
    %47 = arith.addf %46, %28 : vector<8x128xf32>
    %cst_36 = arith.constant 0.000000e+00 : f32
    %48 = vector.broadcast %cst_36 : f32 to vector<8x128xf32>
    %49 = arith.maximumf %47, %48 : vector<8x128xf32>
    %c0_37 = arith.constant 0 : index
    %c0_38 = arith.constant 0 : index
    %50 = vector.load %arg8[%c0_37, %c0_38] : memref<8x128xf32, #tpu.memory_space<vmem>>, vector<8x128xf32>
    tpu.vector_store %arg8[%c0_37, %c0_38], %49 {strides = array<i32>} : memref<8x128xf32, #tpu.memory_space<vmem>>, vector<8x128xf32>,
    return
  }
  func.func @transform_0(%arg0: i32) -> (i32, i32) {
    %c0_i32 = arith.constant 0 : i32
    %c0_i32_0 = arith.constant 0 : i32
    return %arg0, %c0_i32 : i32, i32
  }
  func.func @transform_1(%arg0: i32) -> (i32, i32) {
    %c0_i32 = arith.constant 0 : i32
    %c0_i32_0 = arith.constant 0 : i32
    %c0_i32_1 = arith.constant 0 : i32
    return %c0_i32, %c0_i32_0 : i32, i32
  }
  func.func @transform_2(%arg0: i32) -> (i32, i32) {
    %c0_i32 = arith.constant 0 : i32
    %c0_i32_0 = arith.constant 0 : i32
    %c0_i32_1 = arith.constant 0 : i32
    return %c0_i32, %c0_i32_0 : i32, i32
  }
  func.func @transform_3(%arg0: i32) -> (i32, i32, i32) {
    %c0_i32 = arith.constant 0 : i32
    %c0_i32_0 = arith.constant 0 : i32
    %c0_i32_1 = arith.constant 0 : i32
    %c0_i32_2 = arith.constant 0 : i32
    return %c0_i32, %c0_i32_0, %c0_i32_1 : i32, i32, i32
  }
  func.func @transform_4(%arg0: i32) -> (i32, i32, i32) {
    %c0_i32 = arith.constant 0 : i32
    %c0_i32_0 = arith.constant 0 : i32
    %c0_i32_1 = arith.constant 0 : i32
    %c0_i32_2 = arith.constant 0 : i32
    return %c0_i32, %c0_i32_0, %c0_i32_1 : i32, i32, i32
  }
  func.func @transform_5(%arg0: i32) -> (i32, i32, i32) {
    %c0_i32 = arith.constant 0 : i32
    %c0_i32_0 = arith.constant 0 : i32
    %c0_i32_1 = arith.constant 0 : i32
    %c0_i32_2 = arith.constant 0 : i32
    return %c0_i32, %c0_i32_0, %c0_i32_1 : i32, i32, i32
  }
  func.func @transform_6(%arg0: i32) -> (i32, i32, i32) {
    %c0_i32 = arith.constant 0 : i32
    %c0_i32_0 = arith.constant 0 : i32
    %c0_i32_1 = arith.constant 0 : i32
    %c0_i32_2 = arith.constant 0 : i32
    return %c0_i32, %c0_i32_0, %c0_i32_1 : i32, i32, i32
  }
  func.func @transform_7(%arg0: i32) -> (i32, i32) {
    %c0_i32 = arith.constant 0 : i32
    %c0_i32_0 = arith.constant 0 : i32
    return %arg0, %c0_i32 : i32, i32
  }
}

</mosaic_0001>

<bundles_post_ra>
// kernel: tpu_custom_call.1
= control target key start
LH: loop header
LB: loop body
LE: loop exit
PB: predicated region body
PF: predicated region fallthrough
CT: control target
= control target key end

     0   :  { %12 = vsyncpa [#allocation3], 0  ;;  %s1217_s0 = inlined_call_operand.hbm [shape: bf16[8,128], index: 0, kind: input, shape index: {}]   ;;  %s1218_s1 = inlined_call_operand.hbm [shape: bf16[128,128], index: 1, kind: input, shape index: {}]   ;;  %s1219_s2 = inlined_call_operand.vmem [shape: f32[1,128], index: 2, kind: input, shape index: {}]   ;;  %s1220_s3 = inlined_call_operand.hbm [shape: bf16[2,128,128], index: 3, kind: input, shape index: {}]   ;;  %s1221_s4 = inlined_call_operand.vmem [shape: f32[2,1,128], index: 4, kind: input, shape index: {}]   ;;  %s1222_s5 = inlined_call_operand.hbm [shape: bf16[2,128,128], index: 5, kind: input, shape index: {}]   ;;  %s1223_s6 = inlined_call_operand.vmem [shape: f32[2,1,128], index: 6, kind: input, shape index: {}]   ;;  %s1224_s7 = inlined_call_operand.hbm [shape: f32[8,128], index: 7, kind: output, shape index: {}]  }
   0x1   :  { %13 = vsyncpa [#allocation6], 0 }
   0x2   :  { %14 = vsyncpa [#allocation9], 0 }
   0x3   :  { %15 = vsyncpa [#allocation4], 0  ;;  %s1029_s24 = smov [#allocation5]   ;;  %s911_s28 = scalar_lea.hbm %s1218_s1, 1024 }
   0x4   :  { %s31_s25 = sshll.u32 %s1029_s24, 4  ;;  %p912_p0 = scmp.ne.s32.totalorder %s1218_s1, %s911_s28  ;;  %s32_s25 = int_to_ptr.vmem [resolvable:$true] %s31_s25 }
   0x5   :  { %p915_p1 = scmp.lt.u32.totalorder %s911_s28, %s1218_s1 }
   0x7   :  { %p917_p2 = pnand %p915_p1, %p912_p0 }
   0x9   :  { %920 = shalt.err (!%p917_p2)
}
   0xa   :  { %s921_s10 = scalar_lea.vmem %s32_s25, 1024  ;;  %p926_p4 = scmp.lt.s32.totalorder %s32_s25, %s32_s25 }
   0xb   :  { %p922_p3 = scmp.ne.s32.totalorder %s32_s25, %s921_s10  ;;  %p927_p5 = scmp.lt.s32.totalorder %s921_s10, %s921_s10 }
   0xd   :  { %p928_p6 = por %p927_p5, %p926_p4 }
   0xf   :  { %p929_p7 = pnand %p928_p6, %p922_p3 }
  0x11   :  { %932 = shalt.err (!%p929_p7)
}
  0x12   :  { %s1030_s11 = smov 64   ;;  %s1031_s12 = smov 4  }
  0x13   :  { %37 = dma.hbm_to_vmem [thread:$0]  %s1218_s1, 1024, %s32_s25, [#allocation6], %s1030_s11, %s1030_s11, %s1031_s12  }
  0x14   :  { %s1032_s15 = smov [#allocation2]   ;;  %s1033_s17 = smov [#allocation7]  }
  0x15   :  { %s22_s16 = sshll.u32 %s1032_s15, 4  ;;  %s45_s18 = sshll.u32 %s1033_s17, 4  ;;  %s23_s16 = int_to_ptr.vmem [resolvable:$true] %s22_s16  ;;  %s46_s18 = int_to_ptr.vmem [resolvable:$true] %s45_s18 }
  0x16   :  { %s933_s21 = scalar_lea.hbm %s1217_s0, 64 }
  0x17   :  { %p934_p8 = scmp.ne.s32.totalorder %s1217_s0, %s933_s21  ;;  %p937_p9 = scmp.lt.u32.totalorder %s933_s21, %s1217_s0 }
  0x19   :  { %p939_p10 = pnand %p937_p9, %p934_p8 }
  0x1b   :  { %942 = shalt.err (!%p939_p10)
}
  0x1c   :  { %s943_s1 = scalar_lea.vmem %s23_s16, 64  ;;  %p948_p12 = scmp.lt.s32.totalorder %s23_s16, %s23_s16 }
  0x1d   :  { %p944_p11 = scmp.ne.s32.totalorder %s23_s16, %s943_s1  ;;  %p949_p13 = scmp.lt.s32.totalorder %s943_s1, %s943_s1 }
  0x1f   :  { %p950_p0 = por %p949_p13, %p948_p12 }
  0x21   :  { %p951_p1 = pnand %p950_p0, %p944_p11 }
  0x23   :  { %954 = shalt.err (!%p951_p1)
}
  0x24   :  { %25 = dma.hbm_to_vmem [thread:$0]  %s1217_s0, 64, %s23_s16, [#allocation3]  }
  0x25   :  { %s955_s30 = scalar_lea.hbm %s1220_s3, 2048 }
  0x26   :  { %p956_p2 = scmp.ne.s32.totalorder %s1220_s3, %s955_s30  ;;  %p959_p3 = scmp.lt.u32.totalorder %s955_s30, %s1220_s3 }
  0x28   :  { %p961_p4 = pnand %p959_p3, %p956_p2 }
  0x2a   :  { %964 = shalt.err (!%p961_p4)
}
  0x2b   :  { %s965_s14 = scalar_lea.vmem %s46_s18, 2048  ;;  %p970_p6 = scmp.lt.s32.totalorder %s46_s18, %s46_s18 }
  0x2c   :  { %p966_p5 = scmp.ne.s32.totalorder %s46_s18, %s965_s14  ;;  %p971_p7 = scmp.lt.s32.totalorder %s965_s14, %s965_s14 }
  0x2e   :  { %p972_p8 = por %p971_p7, %p970_p6 }
  0x30   :  { %p973_p9 = pnand %p972_p8, %p966_p5 }
  0x32   :  { %976 = shalt.err (!%p973_p9)
}
  0x33   :  { %51 = dma.hbm_to_vmem [thread:$0]  %s1220_s3, 2048, %s46_s18, [#allocation6], %s1030_s11, %s1030_s11, %s1031_s12  }
  0x34   :  { %s1034_s16 = smov [#allocation8]   ;;  %s977_s21 = scalar_lea.hbm %s1222_s5, 2048 }
  0x35   :  { %s59_s17 = sshll.u32 %s1034_s16, 4  ;;  %p978_p10 = scmp.ne.s32.totalorder %s1222_s5, %s977_s21  ;;  %s60_s17 = int_to_ptr.vmem [resolvable:$true] %s59_s17 }
  0x36   :  { %p981_p11 = scmp.lt.u32.totalorder %s977_s21, %s1222_s5 }
  0x38   :  { %p983_p12 = pnand %p981_p11, %p978_p10 }
  0x3a   :  { %986 = shalt.err (!%p983_p12)
}
  0x3b   :  { %s987_s1 = scalar_lea.vmem %s60_s17, 2048  ;;  %p992_p0 = scmp.lt.s32.totalorder %s60_s17, %s60_s17 }
  0x3c   :  { %p988_p13 = scmp.ne.s32.totalorder %s60_s17, %s987_s1  ;;  %p993_p1 = scmp.lt.s32.totalorder %s987_s1, %s987_s1 }
  0x3e   :  { %p994_p2 = por %p993_p1, %p992_p0 }
  0x40   :  { %p995_p3 = pnand %p994_p2, %p988_p13 }
  0x42   :  { %998 = shalt.err (!%p995_p3)
}
  0x43   :  { %65 = dma.hbm_to_vmem [thread:$0]  %s1222_s5, 2048, %s60_s17, [#allocation9], %s1030_s11, %s1030_s11, %s1031_s12  }
  0x44   :  { %1021 = dma.done.wait [#allocation3], 64  }
  0x45   :  { %1022 = vsyncadd [#allocation3], 4294967232 }
  0x46   :  { %1023 = dma.done.wait [#allocation6], 3072  }
  0x47   :  { %1024 = vsyncadd [#allocation6], 4294964224 }
  0x48   :  { %1025 = dma.done.wait [#allocation9], 2048  }
  0x49   :  { %1026 = vsyncadd [#allocation9], 4294965248  ;;  %v1035_v0 = vmov 0.0   ;;  %vm1036_vm0 = vmmov 0   ;;  %v871_v1 = vld [vmem:[#allocation5] sm:$0xff]   ;;  %v872_v2 = vld [vmem:[#allocation5 + $0x8] sm:$0xff]  }
  0x4a   :  { %762 = vmatprep.subr.bf16.mxu0 %v1035_v0  ;;  %778 = vmatprep.mubr.msk.bf16.mxu0 %vm1036_vm0, %v1035_v0  ;;  %v873_v3 = vld [vmem:[#allocation5 + $0x10] sm:$0xff]   ;;  %v879_v4 = vld [vmem:[#allocation7] sm:$0xff]   ;;  %v874_v5 = vld [vmem:[#allocation5 + $0x18] sm:$0xff]   ;;  %s1037_s9 = smov [#allocation10]  }
  0x4b   :  { %782 = vmatprep.subr.bf16.mxu1 %v1035_v0  ;;  %798 = vmatprep.mubr.msk.bf16.mxu1 %vm1036_vm0, %v1035_v0  ;;  %v880_v6 = vld [vmem:[#allocation7 + $0x8] sm:$0xff]   ;;  %v875_v7 = vld [vmem:[#allocation5 + $0x20] sm:$0xff]   ;;  %v881_v8 = vld [vmem:[#allocation7 + $0x10] sm:$0xff]   ;;  %s659_s10 = sshll.u32 %s1037_s9, 4  ;;  %s660_s10 = int_to_ptr.vmem [resolvable:$true] %s659_s10 }
  0x4c   :  { %763 = vmatpush3.bf16.msra.mxu0 %v871_v1  ;;  %783 = vmatpush3.bf16.msra.mxu1 %v879_v4  ;;  %v876_v9 = vld [vmem:[#allocation5 + $0x28] sm:$0xff]   ;;  %v882_v10 = vld [vmem:[#allocation7 + $0x18] sm:$0xff]   ;;  %v877_v11 = vld [vmem:[#allocation5 + $0x30] sm:$0xff]   ;;  %p1004_p5 = scmp.lt.s32.totalorder %s660_s10, %s660_s10 }
  0x4d   :  { %764 = vmatprep.subr.bf16.mxu0 %v1035_v0  ;;  %784 = vmatprep.subr.bf16.mxu1 %v1035_v0  ;;  %v883_v12 = vld [vmem:[#allocation7 + $0x20] sm:$0xff]   ;;  %v878_v13 = vld [vmem:[#allocation5 + $0x38] sm:$0xff]   ;;  %v884_v14 = vld [vmem:[#allocation7 + $0x28] sm:$0xff]  }
  0x4e   :  { %v81_v15 = vld [vmem:[#allocation2] sm:$0xf]  ;;  %v885_v16 = vld [vmem:[#allocation7 + $0x30] sm:$0xff]   ;;  %v887_v18 = vld [vmem:[#allocation8] sm:$0xff]  }
  0x4f   :  { %v886_v17 = vld [vmem:[#allocation7 + $0x38] sm:$0xff]   ;;  %v888_v19 = vld [vmem:[#allocation8 + $0x8] sm:$0xff]   ;;  %v889_v20 = vld [vmem:[#allocation8 + $0x10] sm:$0xff]  }
  0x50   :  { %765 = vmatpush3.bf16.msra.mxu0 %v872_v2  ;;  %785 = vmatpush3.bf16.msra.mxu1 %v880_v6  ;;  %v890_v21 = vld [vmem:[#allocation8 + $0x18] sm:$0xff]   ;;  %v891_v22 = vld [vmem:[#allocation8 + $0x20] sm:$0xff]   ;;  %v892_v23 = vld [vmem:[#allocation8 + $0x28] sm:$0xff]  }
  0x51   :  { %766 = vmatprep.subr.bf16.mxu0 %v1035_v0  ;;  %786 = vmatprep.subr.bf16.mxu1 %v1035_v0  ;;  %v670_v24 = vld [vmem:[%s1219_s2] ss:$0 sm:$0xff]  ;;  %v893_v32 = vld [vmem:[#allocation8 + $0x30] sm:$0xff]   ;;  %v895_v34 = vld [vmem:[#allocation7 + $0x40] sm:$0xff]  }
  0x52   :  { %v894_v33 = vld [vmem:[#allocation8 + $0x38] sm:$0xff]   ;;  %v896_v35 = vld [vmem:[#allocation7 + $0x48] sm:$0xff]   ;;  %v897_v36 = vld [vmem:[#allocation7 + $0x50] sm:$0xff]  }
  0x53   :  { %v898_v37 = vld [vmem:[#allocation7 + $0x58] sm:$0xff]   ;;  %v899_v38 = vld [vmem:[#allocation7 + $0x60] sm:$0xff]   ;;  %v900_v39 = vld [vmem:[#allocation7 + $0x68] sm:$0xff]  }
  0x54   :  { %767 = vmatpush3.bf16.msra.mxu0 %v873_v3  ;;  %787 = vmatpush3.bf16.msra.mxu1 %v881_v8  ;;  %v679_v40 = vld [vmem:[%s1221_s4] ss:$0 sm:$0xff]  ;;  %v901_v48 = vld [vmem:[#allocation7 + $0x70] sm:$0xff]   ;;  %v903_v50 = vld [vmem:[#allocation8 + $0x40] sm:$0xff]  }
  0x55   :  { %768 = vmatprep.subr.bf16.mxu0 %v1035_v0  ;;  %788 = vmatprep.subr.bf16.mxu1 %v1035_v0  ;;  %v902_v49 = vld [vmem:[#allocation7 + $0x78] sm:$0xff]   ;;  %v904_v51 = vld [vmem:[#allocation8 + $0x48] sm:$0xff]   ;;  %v905_v52 = vld [vmem:[#allocation8 + $0x50] sm:$0xff]  }
  0x56   :  { %v906_v53 = vld [vmem:[#allocation8 + $0x58] sm:$0xff]   ;;  %v907_v54 = vld [vmem:[#allocation8 + $0x60] sm:$0xff]   ;;  %v908_v55 = vld [vmem:[#allocation8 + $0x68] sm:$0xff]  }
  0x57   :  { %v688_v56 = vld [vmem:[%s1223_s6] ss:$0 sm:$0xff]  ;;  %v909_v2 = vld [vmem:[#allocation8 + $0x70] sm:$0xff]   ;;  %v698_v4 = vld [vmem:[%s1221_s4 + $0x1] ss:$0 sm:$0xff]  ;;  %s999_s4 = scalar_lea.vmem %s660_s10, 128 }
  0x58   :  { %769 = vmatpush3.bf16.msra.mxu0 %v874_v5  ;;  %789 = vmatpush3.bf16.msra.mxu1 %v882_v10  ;;  %v910_v3 = vld [vmem:[#allocation8 + $0x78] sm:$0xff]   ;;  %p1000_p4 = scmp.ne.s32.totalorder %s660_s10, %s999_s4  ;;  %p1005_p6 = scmp.lt.s32.totalorder %s999_s4, %s999_s4 }
  0x59   :  { %770 = vmatprep.subr.bf16.mxu0 %v1035_v0  ;;  %790 = vmatprep.subr.bf16.mxu1 %v1035_v0 }
  0x5a   :  { %p1006_p7 = por %p1005_p6, %p1004_p5 }
  0x5c   :  { %771 = vmatpush3.bf16.msra.mxu0 %v875_v7  ;;  %791 = vmatpush3.bf16.msra.mxu1 %v883_v12  ;;  %v708_v12 = vld [vmem:[%s1223_s6 + $0x1] ss:$0 sm:$0xff]  ;;  %p1007_p8 = pnand %p1006_p7, %p1000_p4 }
  0x5d   :  { %772 = vmatprep.subr.bf16.mxu0 %v1035_v0  ;;  %792 = vmatprep.subr.bf16.mxu1 %v1035_v0 }
  0x60   :  { %773 = vmatpush3.bf16.msra.mxu0 %v876_v9  ;;  %793 = vmatpush3.bf16.msra.mxu1 %v884_v14 }
  0x61   :  { %774 = vmatprep.subr.bf16.mxu0 %v1035_v0  ;;  %794 = vmatprep.subr.bf16.mxu1 %v1035_v0 }
  0x64   :  { %775 = vmatpush3.bf16.msra.mxu0 %v877_v11  ;;  %795 = vmatpush3.bf16.msra.mxu1 %v885_v16 }
  0x65   :  { %776 = vmatprep.subr.bf16.mxu0 %v1035_v0  ;;  %796 = vmatprep.subr.bf16.mxu1 %v1035_v0 }
  0x68   :  { %777 = vmatpush3.bf16.msra.mxu0 %v878_v13  ;;  %797 = vmatpush3.bf16.msra.mxu1 %v886_v17 }
  0x69   :  { %802 = vmatprep.subr.bf16.mxu0 %v1035_v0  ;;  %822 = vmatprep.subr.bf16.mxu1 %v1035_v0 }
  0x6b   :  { %779 = vmatmul.mubr.bf16.vlgmr.msra.gmra.mrb[0].mxu0 %v81_v15 }
  0x6c   :  { %818 = vmatprep.mubr.msk.bf16.mxu0 %vm1036_vm0, %v1035_v0  ;;  %803 = vmatpush3.bf16.msra.mxu0 %v887_v18 }
  0x6d   :  { %804 = vmatprep.subr.bf16.mxu0 %v1035_v0 }
  0x70   :  { %805 = vmatpush3.bf16.msra.mxu0 %v888_v19 }
  0x71   :  { %806 = vmatprep.subr.bf16.mxu0 %v1035_v0 }
  0x74   :  { %807 = vmatpush3.bf16.msra.mxu0 %v889_v20 }
  0x75   :  { %808 = vmatprep.subr.bf16.mxu0 %v1035_v0 }
  0x78   :  { %809 = vmatpush3.bf16.msra.mxu0 %v890_v21 }
  0x79   :  { %810 = vmatprep.subr.bf16.mxu0 %v1035_v0 }
  0x7c   :  { %811 = vmatpush3.bf16.msra.mxu0 %v891_v22 }
  0x7d   :  { %812 = vmatprep.subr.bf16.mxu0 %v1035_v0 }
  0x80   :  { %813 = vmatpush3.bf16.msra.mxu0 %v892_v23 }
  0x81   :  { %814 = vmatprep.subr.bf16.mxu0 %v1035_v0 }
  0x84   :  { %815 = vmatpush3.bf16.msra.mxu0 %v893_v32 }
  0x85   :  { %816 = vmatprep.subr.bf16.mxu0 %v1035_v0 }
  0x88   :  { %817 = vmatpush3.bf16.msra.mxu0 %v894_v33 }
  0x89   :  { %842 = vmatprep.subr.bf16.mxu0 %v1035_v0 }
 0x13e   :  { %v187_v25 = vpop.f32.mrb[0].mxu0 }
 0x13f   :  { %v188_v26 = vadd.f32 %v670_v24, %v187_v25  ;;  %v780_v27 = vpop.f32.mrb[1].mxu0 }
 0x140   :  { %v190_v28 = vpop.f32.mrb[2].mxu0 }
 0x141   :  { %v1168_v29 = vmax.f32 %v188_v26, 0.0  ;;  %v781_v30 = vpop.f32.mrb[3].mxu0 }
 0x143   :  { %v194_v31 = vpack.c.bf16 %v1168_v29, %v1168_v29 }
 0x145   :  { %799 = vmatmul.mubr.bf16.vlgmr.msra.gmra.mrb[0].mxu1 %v194_v31 }
 0x146   :  { %838 = vmatprep.mubr.msk.bf16.mxu1 %vm1036_vm0, %v1035_v0  ;;  %823 = vmatpush3.bf16.msra.mxu1 %v895_v34 }
 0x147   :  { %824 = vmatprep.subr.bf16.mxu1 %v1035_v0 }
 0x14a   :  { %825 = vmatpush3.bf16.msra.mxu1 %v896_v35 }
 0x14b   :  { %826 = vmatprep.subr.bf16.mxu1 %v1035_v0 }
 0x14e   :  { %827 = vmatpush3.bf16.msra.mxu1 %v897_v36 }
 0x14f   :  { %828 = vmatprep.subr.bf16.mxu1 %v1035_v0 }
 0x152   :  { %829 = vmatpush3.bf16.msra.mxu1 %v898_v37 }
 0x153   :  { %830 = vmatprep.subr.bf16.mxu1 %v1035_v0 }
 0x156   :  { %831 = vmatpush3.bf16.msra.mxu1 %v899_v38 }
 0x157   :  { %832 = vmatprep.subr.bf16.mxu1 %v1035_v0 }
 0x15a   :  { %833 = vmatpush3.bf16.msra.mxu1 %v900_v39 }
 0x15b   :  { %834 = vmatprep.subr.bf16.mxu1 %v1035_v0 }
 0x15e   :  { %835 = vmatpush3.bf16.msra.mxu1 %v901_v48 }
 0x15f   :  { %836 = vmatprep.subr.bf16.mxu1 %v1035_v0 }
 0x162   :  { %837 = vmatpush3.bf16.msra.mxu1 %v902_v49 }
 0x218   :  { %v300_v41 = vpop.f32.mrb[0].mxu1 }
 0x219   :  { %v301_v42 = vadd.f32 %v679_v40, %v300_v41  ;;  %v800_v43 = vpop.f32.mrb[1].mxu1 }
 0x21a   :  { %v303_v44 = vpop.f32.mrb[2].mxu1 }
 0x21b   :  { %v306_v45 = vmax.f32 %v301_v42, 0.0  ;;  %v801_v46 = vpop.f32.mrb[3].mxu1 }
 0x21d   :  { %v307_v47 = vpack.c.bf16 %v306_v45, %v306_v45 }
 0x21f   :  { %819 = vmatmul.mubr.bf16.vlgmr.msra.gmra.mrb[4].mxu0 %v307_v47 }
 0x220   :  { %858 = vmatprep.mubr.msk.bf16.mxu0 %vm1036_vm0, %v1035_v0  ;;  %843 = vmatpush3.bf16.msra.mxu0 %v903_v50 }
 0x221   :  { %844 = vmatprep.subr.bf16.mxu0 %v1035_v0 }
 0x224   :  { %845 = vmatpush3.bf16.msra.mxu0 %v904_v51 }
 0x225   :  { %846 = vmatprep.subr.bf16.mxu0 %v1035_v0 }
 0x228   :  { %847 = vmatpush3.bf16.msra.mxu0 %v905_v52 }
 0x229   :  { %848 = vmatprep.subr.bf16.mxu0 %v1035_v0 }
 0x22c   :  { %849 = vmatpush3.bf16.msra.mxu0 %v906_v53 }
 0x22d   :  { %850 = vmatprep.subr.bf16.mxu0 %v1035_v0 }
 0x230   :  { %851 = vmatpush3.bf16.msra.mxu0 %v907_v54 }
 0x231   :  { %852 = vmatprep.subr.bf16.mxu0 %v1035_v0 }
 0x234   :  { %853 = vmatpush3.bf16.msra.mxu0 %v908_v55 }
 0x235   :  { %854 = vmatprep.subr.bf16.mxu0 %v1035_v0 }
 0x238   :  { %855 = vmatpush3.bf16.msra.mxu0 %v909_v2 }
 0x239   :  { %856 = vmatprep.subr.bf16.mxu0 %v1035_v0 }
 0x23c   :  { %857 = vmatpush3.bf16.msra.mxu0 %v910_v3 }
 0x2f2   :  { %v413_v57 = vpop.f32.mrb[4].mxu0 }
 0x2f3   :  { %v414_v58 = vadd.f32 %v688_v56, %v413_v57  ;;  %v820_v59 = vpop.f32.mrb[5].mxu0 }
 0x2f4   :  { %v416_v60 = vpop.f32.mrb[6].mxu0 }
 0x2f5   :  { %v419_v61 = vadd.f32 %v414_v58, %v1168_v29  ;;  %v821_v62 = vpop.f32.mrb[7].mxu0 }
 0x2f7   :  { %v420_v63 = vmax.f32 %v419_v61, 0.0 }
 0x2f9   :  { %v421_v1 = vpack.c.bf16 %v420_v63, %v420_v63 }
 0x2fb   :  { %839 = vmatmul.mubr.bf16.vlgmr.msra.gmra.mrb[4].mxu1 %v421_v1 }
 0x3ce   :  { %v529_v5 = vpop.f32.mrb[4].mxu1 }
 0x3cf   :  { %v530_v6 = vadd.f32 %v698_v4, %v529_v5  ;;  %v840_v7 = vpop.f32.mrb[5].mxu1 }
 0x3d0   :  { %v532_v8 = vpop.f32.mrb[6].mxu1 }
 0x3d1   :  { %v535_v9 = vmax.f32 %v530_v6, 0.0  ;;  %v841_v10 = vpop.f32.mrb[7].mxu1 }
 0x3d3   :  { %v536_v11 = vpack.c.bf16 %v535_v9, %v535_v9 }
 0x3d5   :  { %859 = vmatmul.mubr.bf16.vlgmr.msra.gmra.mrb[8].mxu0 %v536_v11 }
 0x4a8   :  { %v644_v13 = vpop.f32.mrb[8].mxu0 }
 0x4a9   :  { %v645_v0 = vadd.f32 %v708_v12, %v644_v13  ;;  %v860_v14 = vpop.f32.mrb[9].mxu0 }
 0x4aa   :  { %v647_v15 = vpop.f32.mrb[10].mxu0 }
 0x4ab   :  { %v650_v16 = vadd.f32 %v645_v0, %v420_v63  ;;  %v861_v17 = vpop.f32.mrb[11].mxu0 }
 0x4ad   :  { %v651_v18 = vmax.f32 %v650_v16, 0.0 }
 0x4af   :  { %652 = vst [vmem:[#allocation10] sm:$0xff] %v651_v18 }
 0x4b0   :  { %1010 = shalt.err (!%p1007_p8)
}
 0x4b1   :  { %s1011_s14 = scalar_lea.hbm %s1224_s7, 128 }
 0x4b2   :  { %p1012_p9 = scmp.ne.s32.totalorder %s1224_s7, %s1011_s14  ;;  %p1015_p10 = scmp.lt.u32.totalorder %s1011_s14, %s1224_s7 }
 0x4b4   :  { %p1017_p11 = pnand %p1015_p10, %p1012_p9 }
 0x4b6   :  { %1020 = shalt.err (!%p1017_p11)
}
 0x4b7   :  { %662 = dma.vmem_to_hbm [thread:$0]  %s660_s10, 128, %s1224_s7, [#allocation4]  }
 0x4b8   :  { %1027 = dma.done.wait [#allocation4], 128  }
 0x4b9   :  { %1028 = vsyncadd [#allocation4], 4294967168 }
 0x4ba   :  { %666 = vsyncpa [#allocation3], 1 }
 0x4bb   :  { %667 = vsyncpa [#allocation6], 1 }
 0x4bc   :  { %668 = vsyncpa [#allocation9], 1 }
 0x4bd   :  { %669 = vsyncpa [#allocation4], 1 }

</bundles_post_ra>
